<compile_context>
chip_gen: v5e
topology: v5e:2x2
jax: 0.10.0
libtpu: 0.0.40
codegen_flags: <defaults>
</compile_context>

<pallas_src>
import functools

import jax
import jax.numpy as jnp
from jax.experimental import pallas as pl
from jax.experimental.pallas import tpu as pltpu

INPUT_SIZE = 10
HIDDEN_SIZE = 20
SCALING_FACTOR = 1.5


def _packed_matmul_kernel(xp_ref, wbd_ref, o_ref):
    """Lane-dense path.

    xp_ref : (tg, R*K)  packed x rows (R logical rows per packed row)
    wbd_ref: (R*K, R)   block-diagonal folded weight (scale already applied)
    o_ref  : (tg, R)    one scalar per logical row
    """
    o_ref[...] = jnp.dot(
        xp_ref[...],
        wbd_ref[...],
        precision=jax.lax.Precision.HIGHEST,
        preferred_element_type=jnp.float32,
    ).astype(o_ref.dtype)


def _rowsum_kernel(x_ref, wf_ref, o_ref):
    """Fallback path (B not a multiple of 64).

    x_ref : (tb, K)  lane-sparse block (lane-padded to (tb, 128) in VMEM)
    wf_ref: (1, K)   folded, pre-scaled weight
    o_ref : (1, tb)  lane-dense output row
    """
    y = jnp.sum(x_ref[...] * wf_ref[...], axis=1)  # VPU mul + lane reduce
    o_ref[...] = y[None, :].astype(o_ref.dtype)


def gemm_divide_sum_scale(x, weight, scaling_factor=SCALING_FACTOR, *,
                          rows_per_step=65536):
    """out[b, 0] = scaling_factor * sum_h( (x @ weight.T)[b, h] / 2 )."""
    B, K = x.shape
    H, K2 = weight.shape
    assert K == K2, "input_size mismatch"

    # Fold the hidden-dim reduction, the /2 and the *scaling_factor into ONE
    # tiny (K,) vector in the wrapper (200 elements -> negligible XLA op).
    combined_scale = 0.5 * float(scaling_factor)
    w_fold = (jnp.sum(weight.astype(jnp.float32), axis=0) * combined_scale)  # (K,)

    # Pick a packing factor R so x can be viewed lane-dense as (B/R, R*K).
    # With K=10: R=128 -> 1280 lanes (fully dense both sides),
    #            R=64  -> 640 lanes  (dense input, 64-wide output block = full dim).
    R = 0
    for cand in (128, 64):
        if B >= cand and B % cand == 0:
            R = cand
            break

    if R:
        G = B // R
        # Free view: x is contiguous row-major, so this reshape is metadata-only.
        xp = x.reshape(G, R * K)
        # Block-diagonal folded weight: Wbd[r*K + k, c] = w_fold[k] * (r == c).
        eye = jnp.eye(R, dtype=jnp.float32)
        wbd = (eye[:, None, :] * w_fold[None, :, None]).reshape(R * K, R)

        # Groups per grid step (multiple of 8 sublanes).
        tg = max(8, ((rows_per_step // R) // 8) * 8)

        if G <= tg:
            # Whole problem in one tile: no grid machinery, one DMA in/out.
            out = pl.pallas_call(
                _packed_matmul_kernel,
                out_shape=jax.ShapeDtypeStruct((G, R), jnp.float32),
                in_specs=[
                    pl.BlockSpec(memory_space=pltpu.MemorySpace.VMEM),
                    pl.BlockSpec(memory_space=pltpu.MemorySpace.VMEM),
                ],
                out_specs=pl.BlockSpec(memory_space=pltpu.MemorySpace.VMEM),
            )(xp, wbd)
        else:
            # Batch-tiled, megacore-shardable.  VMEM/step (tg=512, K=10):
            # x 2.5 MiB x 2 buffers + wbd 640 KB + out 256 KB  ~ 6 MiB.
            grid = (pl.cdiv(G, tg),)
            out = pl.pallas_call(
                _packed_matmul_kernel,
                out_shape=jax.ShapeDtypeStruct((G, R), jnp.float32),
                grid=grid,
                in_specs=[
                    pl.BlockSpec((tg, R * K), lambda i: (i, 0)),
                    pl.BlockSpec((R * K, R), lambda i: (0, 0)),  # resident weight
                ],
                out_specs=pl.BlockSpec((tg, R), lambda i: (i, 0)),
                compiler_params=pltpu.CompilerParams(
                    dimension_semantics=("parallel",),  # v7x: shard batch over 2 TCs
                ),
            )(xp, wbd)
        return out.reshape(B, 1)

    # -------- Fallback: B not a multiple of 64 (lane-sparse (tb, K) layout) ----
    wf = w_fold.reshape(1, K)
    if B <= 8192:
        # Single shot; (B, 10) lane-pads to (B, 128) = 512 B/row -> <= 4 MiB.
        out_row = pl.pallas_call(
            _rowsum_kernel,
            out_shape=jax.ShapeDtypeStruct((1, B), jnp.float32),
            in_specs=[
                pl.BlockSpec(memory_space=pltpu.MemorySpace.VMEM),
                pl.BlockSpec(memory_space=pltpu.MemorySpace.VMEM),
            ],
            out_specs=pl.BlockSpec(memory_space=pltpu.MemorySpace.VMEM),
        )(x, wf)
    else:
        # tb=8192 -> 4 MiB/buffer after lane padding; Buffered(3) = 12 MiB,
        # inside v5e's 16 MiB scoped-VMEM default (v6e/v7x have 32 MiB scoped).
        tb = 8192
        grid = (pl.cdiv(B, tb),)
        out_row = pl.pallas_call(
            _rowsum_kernel,
            out_shape=jax.ShapeDtypeStruct((1, B), jnp.float32),
            grid=grid,
            in_specs=[
                pl.BlockSpec((tb, K), lambda i: (i, 0),
                             pipeline_mode=pl.Buffered(3)),
                pl.BlockSpec((1, K), lambda i: (0, 0)),
            ],
            out_specs=pl.BlockSpec((1, tb), lambda i: (0, i)),
            compiler_params=pltpu.CompilerParams(
                dimension_semantics=("parallel",),
            ),
        )(x, wf)
    return out_row.reshape(B, 1)


def reference(x, weight, scaling_factor=SCALING_FACTOR):
    # Mirrors the PyTorch module; HIGHEST precision so the check is tight f32.
    h = jnp.matmul(x, weight.T, precision=jax.lax.Precision.HIGHEST)
    h = h / 2.0
    s = jnp.sum(h, axis=1, keepdims=True)
    return s * scaling_factor


def _check(B, key, weight, **kwargs):
    x = jax.random.normal(key, (B, INPUT_SIZE), dtype=jnp.float32)
    out = jax.block_until_ready(gemm_divide_sum_scale(x, weight, SCALING_FACTOR, **kwargs))
    ref = reference(x, weight, SCALING_FACTOR)
    assert out.shape == (B, 1), out.shape
    assert jnp.allclose(out, ref, atol=1e-5, rtol=1e-4), (B, out, ref)


if __name__ == "__main__":
    key = jax.random.PRNGKey(0)
    kw, k1, k2, k3, k4 = jax.random.split(key, 5)
    weight = jax.random.normal(kw, (HIDDEN_SIZE, INPUT_SIZE), dtype=jnp.float32) * 0.02

    # 1) Small batch (module-sized): fallback single-shot kernel (B % 64 != 0).
    _check(8, k1, weight)

    # 2) Lane-dense single-shot path (B % 128 == 0, fits one tile).
    _check(256, k2, weight)

    # 3) Lane-dense grid path with a partial trailing block (G=20, tg=8).
    _check(2560, k3, weight, rows_per_step=1024)

    # 4) Fallback grid path (large B, not a multiple of 64): padded layout,
    #    tb=8192, Buffered(3), partial trailing block.
    _check(8200, k4, weight)

    print("KERNEL_OK")
</pallas_src>

<mosaic_0001>
module attributes {stable_mosaic.version = 11 : i64} {
  func.func @_rowsum_kernel(%arg0: memref<8x10xf32, #tpu.memory_space<vmem>>, %arg1: memref<1x10xf32, #tpu.memory_space<vmem>>, %arg2: memref<1x8xf32, #tpu.memory_space<vmem>>) attributes {dimension_semantics = [], scalar_prefetch = 0 : i64, scratch_operands = 0 : i64, tpu.core_type = #tpu.core_type<tc>} {
    %c0 = arith.constant 0 : index
    %c0_0 = arith.constant 0 : index
    %0 = vector.load %arg0[%c0, %c0_0] : memref<8x10xf32, #tpu.memory_space<vmem>>, vector<8x10xf32>
    %c0_1 = arith.constant 0 : index
    %c0_2 = arith.constant 0 : index
    %1 = vector.load %arg1[%c0_1, %c0_2] : memref<1x10xf32, #tpu.memory_space<vmem>>, vector<1x10xf32>
    %2 = vector.broadcast %1 : vector<1x10xf32> to vector<8x10xf32>
    %3 = arith.mulf %0, %2 : vector<8x10xf32>
    %cst = arith.constant dense<0.000000e+00> : vector<8xf32>
    %4 = vector.multi_reduction <add>, %3, %cst [1] : vector<8x10xf32> to vector<8xf32>
    %5 = vector.shape_cast %4 : vector<8xf32> to vector<1x8xf32>
    %c0_3 = arith.constant 0 : index
    %c0_4 = arith.constant 0 : index
    %6 = vector.load %arg2[%c0_3, %c0_4] : memref<1x8xf32, #tpu.memory_space<vmem>>, vector<1x8xf32>
    tpu.vector_store %arg2[%c0_3, %c0_4], %5 {strides = array<i32>} : memref<1x8xf32, #tpu.memory_space<vmem>>, vector<1x8xf32>,
    return
  }
}

</mosaic_0001>

<bundles_post_ra>
// kernel: tpu_custom_call.1
= control target key start
LH: loop header
LB: loop body
LE: loop exit
PB: predicated region body
PF: predicated region fallthrough
CT: control target
= control target key end

     0   :  { %7 = vsyncpa [#allocation3], 0  ;;  %s184_s0 = inlined_call_operand.hbm [shape: f32[8,10], index: 0, kind: input, shape index: {}]   ;;  %s185_s1 = inlined_call_operand.hbm [shape: f32[1,10], index: 1, kind: input, shape index: {}]   ;;  %s186_s2 = inlined_call_operand.hbm [shape: f32[1,8], index: 2, kind: output, shape index: {}]  }
   0x1   :  { %8 = vsyncpa [#allocation6], 0 }
   0x2   :  { %9 = vsyncpa [#allocation4], 0  ;;  %s15_s11 = sshll.u32 %s184_s0, 4  ;;  %s157_s12 = smov [#allocation2]   ;;  %s16_s11 = int_to_ptr.hbm [resolvable:$true] %s15_s11 }
   0x3   :  { %s17_s13 = sshll.u32 %s157_s12, 4  ;;  %s26_s16 = sshll.u32 %s185_s1, 4  ;;  %s18_s13 = int_to_ptr.vmem [resolvable:$true] %s17_s13  ;;  %s27_s16 = int_to_ptr.hbm [resolvable:$true] %s26_s16 }
   0x4   :  { %20 = dma.hbm_to_vmem [thread:$0]  %s16_s11, 128, %s18_s13, [#allocation3]  }
   0x5   :  { %s158_s17 = smov [#allocation5]  }
   0x6   :  { %s28_s18 = sshll.u32 %s158_s17, 4  ;;  %s29_s18 = int_to_ptr.vmem [resolvable:$true] %s28_s18 }
   0x7   :  { %31 = dma.hbm_to_vmem [thread:$0]  %s27_s16, 16, %s29_s18, [#allocation6]  }
   0x8   :  { %151 = dma.done.wait [#allocation3], 128  }
   0x9   :  { %152 = vsyncadd [#allocation3], 4294967168 }
   0xa   :  { %153 = dma.done.wait [#allocation6], 16  }
   0xb   :  { %154 = vsyncadd [#allocation6], 4294967280  ;;  %v40_v0 = vld [vmem:[#allocation2] sm:$0xff]  ;;  %v78_v1 = vld [vmem:[#allocation5] ss:$0 sm:$0xff]  ;;  %vm46_vm0 = vcmask 80896   ;;  %v51_v4 = vlaneseq }
   0xc   :  { %v45_v2 = vmul.f32 %v78_v1, %v40_v0  ;;  %s159_s0 = smov [#allocation7]   ;;  %s64_s21 = sshll.u32 %s186_s2, 4  ;;  %vm55_vm1 = vcmask 57344   ;;  %s65_s21 = int_to_ptr.hbm [resolvable:$true] %s64_s21 }
   0xd   :  { %v52_v5 = vand.u32 127, %v51_v4  ;;  %s62_s1 = sshll.u32 %s159_s0, 4  ;;  %s63_s1 = int_to_ptr.vmem [resolvable:$true] %s62_s1 }
   0xe   :  { %v47_v3 = vsel %vm46_vm0, %v45_v2, 0.0 }
   0xf   :  { %48 = vadd.xlane.f32.xlu0 %v47_v3 }
  0x82   :  { %v49_v6 = vpop.xlane.xlu0 %48 }
  0x83   :  { %v53_v7 = vperm.slane %v49_v6, %v52_v5 }
  0x85   :  { %56 = vst.msk [vmem:[#allocation7] sm:$0x1] %vm55_vm1, %v53_v7 }
  0x86   :  { %67 = dma.vmem_to_hbm [thread:$0]  %s63_s1, 16, %s65_s21, [#allocation4]  }
  0x87   :  { %155 = dma.done.wait [#allocation4], 16  }
  0x88   :  { %156 = vsyncadd [#allocation4], 4294967280 }
  0x89   :  { %72 = vsyncpa [#allocation3], 1 }
  0x8a   :  { %73 = vsyncpa [#allocation6], 1 }
  0x8b   :  { %74 = vsyncpa [#allocation4], 1 }

</bundles_post_ra>
